<compile_context>
chip_gen: v7x
topology: tpu7x:2x2x1
jax: 0.10.0
libtpu: 0.0.40
codegen_flags: <defaults>
</compile_context>

<pallas_src>
import jax
import jax.numpy as jnp
from jax.experimental import pallas as pl
from jax.experimental.pallas import tpu as pltpu

LANES = 128


def xor_mlp_kernel(params_ref, x_ref, o_ref):
    """params_ref: SMEM (17,) f32 = [w1 (4x2 row-major), b1 (4), w2 (4), b2 (1)].
    x_ref: VMEM (2, tr, 128) f32 (batch on sublanes x lanes).  o_ref: VMEM (tr, 128) f32."""
    x0 = x_ref[0]   # (tr, 128) feature 0 across the batch tile -- dense vregs
    x1 = x_ref[1]   # (tr, 128) feature 1

    # z = b2 + sum_j w2[j] * relu(w1[j,0]*x0 + w1[j,1]*x1 + b1[j])  -- pure VPU FMAs,
    # unrolled at trace time (8 FMAs + 4 max + 4 FMAs per tile).
    acc = None
    for j in range(4):
        h_j = x0 * params_ref[2 * j] + x1 * params_ref[2 * j + 1] + params_ref[8 + j]
        h_j = jnp.maximum(h_j, 0.0)                 # ReLU
        term = h_j * params_ref[12 + j]
        acc = term if acc is None else acc + term

    z = acc + params_ref[16]                        # scalar b2 added once at the end
    # sigmoid = 1 / (1 + exp(-z)): exp and the approximate reciprocal both go to the EUP.
    o_ref[...] = pl.reciprocal(1.0 + jnp.exp(-z), approx=True)


def pack_xor_params(w1, b1, w2, b2):
    """Fold the PyTorch-layout params (w1:(4,2), b1:(4,), w2:(1,4), b2:(1,)) into one
    flat f32 vector.  Do this ONCE at parameter-prep time, not per forward call."""
    return jnp.concatenate(
        [w1.reshape(-1), b1.reshape(-1), w2.reshape(-1), b2.reshape(-1)]
    ).astype(jnp.float32)


def xor_model_forward(params, x):
    """params: (17,) f32 packed by pack_xor_params.  x: (B, 2) f32.  Returns (B, 1) f32."""
    B = x.shape[0]
    R = pl.cdiv(B, LANES)              # batch rows of 128 lane elements
    b_pad = R * LANES

    # Rows-per-block: sublane-aligned (multiple of 8), big enough to amortize the ~0.35 us
    # per-grid-step overhead (several MiB of I/O per step), small enough that the
    # double-buffered working set (~24 B per batch element) fits every generation's scoped
    # VMEM default, and >= 2 blocks when possible so v7x's two TensorCores both get work.
    MAX_TR = 4096                      # 4096 rows -> ~6 MiB per block, ~12 MiB double-buffered
    if R <= 8:
        tr = R                         # tiny batch: one block (block dim == full array dim)
    else:
        tr = min(MAX_TR, ((pl.cdiv(R, 2) + 7) // 8) * 8)
    n_blocks = pl.cdiv(R, tr)          # ragged last block is masked by Pallas

    # Single fused layout op (cast + transpose + pad) producing the lane-dense (2, R, 128)
    # view of the batch.  Padded / ragged lanes compute garbage but are never written back
    # to user-visible rows and are sliced off below.
    # TODO(synk): have the producer emit x in (2, R, 128) layout to remove this copy entirely.
    x_t = jnp.pad(x.T.astype(jnp.float32), ((0, 0), (0, b_pad - B))).reshape(2, R, LANES)

    out = pl.pallas_call(
        xor_mlp_kernel,
        out_shape=jax.ShapeDtypeStruct((R, LANES), jnp.float32),
        grid=(n_blocks,),
        in_specs=[
            pl.BlockSpec(memory_space=pltpu.SMEM),              # all 17 params -> SMEM scalars
            pl.BlockSpec((2, tr, LANES), lambda i: (0, i, 0)),  # dense (8,128)-tiled batch
        ],
        out_specs=pl.BlockSpec((tr, LANES), lambda i: (i, 0)),  # lane-dense output slab
        compiler_params=pltpu.CompilerParams(
            dimension_semantics=("parallel",),                  # megacore-shardable on v7x
            vmem_limit_bytes=32 * 1024 * 1024,                  # > v5e's 16 MiB scoped default
        ),
        cost_estimate=pl.CostEstimate(
            flops=30 * b_pad,                                   # ~30 VPU ops / element
            transcendentals=2 * b_pad,                          # exp + reciprocal
            bytes_accessed=12 * b_pad,                          # 8 B in + 4 B out / element
        ),
    )(params, x_t)

    # (R, 128) -> (B, 1); row-major flatten is pure layout glue.
    return out.reshape(-1)[:B].reshape(B, 1)


def xor_model_reference(x, w1, b1, w2, b2):
    h = jnp.maximum(
        jnp.matmul(x, w1.T, precision=jax.lax.Precision.HIGHEST) + b1, 0.0
    )
    z = jnp.matmul(h, w2.T, precision=jax.lax.Precision.HIGHEST) + b2
    return jax.nn.sigmoid(z)


if __name__ == "__main__":
    key = jax.random.PRNGKey(0)
    k_x, k_w1, k_b1, k_w2, k_b2 = jax.random.split(key, 5)

    batch = 8
    # Input: pairs of {0,1} values (XOR-style inputs), float32.
    x = jax.random.bernoulli(k_x, 0.5, (batch, 2)).astype(jnp.float32)

    # Deterministic parameter init matching nn.Linear shapes.
    w1 = jax.random.normal(k_w1, (4, 2), dtype=jnp.float32) * 0.5   # layer1.weight
    b1 = jax.random.normal(k_b1, (4,), dtype=jnp.float32) * 0.1     # layer1.bias
    w2 = jax.random.normal(k_w2, (1, 4), dtype=jnp.float32) * 0.5   # layer2.weight
    b2 = jax.random.normal(k_b2, (1,), dtype=jnp.float32) * 0.1     # layer2.bias

    params = pack_xor_params(w1, b1, w2, b2)   # packed once, outside the forward pass

    out = xor_model_forward(params, x)
    out = jax.block_until_ready(out)

    ref = xor_model_reference(x, w1, b1, w2, b2)
    assert out.shape == (batch, 1), out.shape
    # Slightly looser tolerance than exact f32: the sigmoid divide uses the EUP's
    # approximate reciprocal (pl.reciprocal(approx=True)).
    assert jnp.allclose(out, ref, atol=5e-3, rtol=5e-3), (out, ref)

    print("KERNEL_OK")
</pallas_src>

<mosaic_0001>
module attributes {stable_mosaic.version = 11 : i64} {
  func.func @xor_mlp_kernel(%arg0: i32, %arg1: memref<17xf32, #tpu.memory_space<smem>>, %arg2: memref<2x1x128xf32, #tpu.memory_space<vmem>>, %arg3: memref<1x128xf32, #tpu.memory_space<vmem>>) attributes {dimension_semantics = [#tpu.dimension_semantics<parallel>], iteration_bounds = array<i64: 1>, scalar_prefetch = 0 : i64, scratch_operands = 0 : i64, tpu.core_type = #tpu.core_type<tc>, window_params = [{transform_indices = @transform_0, window_bounds = array<i64: 17>}, {transform_indices = @transform_1, window_bounds = array<i64: 2, 1, 128>}, {transform_indices = @transform_2, window_bounds = array<i64: 1, 128>}]} {
    %c0 = arith.constant 0 : index
    %c0_0 = arith.constant 0 : index
    %c0_1 = arith.constant 0 : index
    %0 = vector.load %arg2[%c0, %c0_0, %c0_1] : memref<2x1x128xf32, #tpu.memory_space<vmem>>, vector<1x1x128xf32>
    %1 = vector.shape_cast %0 : vector<1x1x128xf32> to vector<1x128xf32>
    %c1 = arith.constant 1 : index
    %c0_2 = arith.constant 0 : index
    %c0_3 = arith.constant 0 : index
    %2 = vector.load %arg2[%c1, %c0_2, %c0_3] : memref<2x1x128xf32, #tpu.memory_space<vmem>>, vector<1x1x128xf32>
    %3 = vector.shape_cast %2 : vector<1x1x128xf32> to vector<1x128xf32>
    %c0_4 = arith.constant 0 : index
    %4 = memref.load %arg1[%c0_4] : memref<17xf32, #tpu.memory_space<smem>>
    %5 = vector.broadcast %4 : f32 to vector<1x128xf32>
    %6 = arith.mulf %1, %5 : vector<1x128xf32>
    %c1_5 = arith.constant 1 : index
    %7 = memref.load %arg1[%c1_5] : memref<17xf32, #tpu.memory_space<smem>>
    %8 = vector.broadcast %7 : f32 to vector<1x128xf32>
    %9 = arith.mulf %3, %8 : vector<1x128xf32>
    %10 = arith.addf %6, %9 : vector<1x128xf32>
    %c8 = arith.constant 8 : index
    %11 = memref.load %arg1[%c8] : memref<17xf32, #tpu.memory_space<smem>>
    %12 = vector.broadcast %11 : f32 to vector<1x128xf32>
    %13 = arith.addf %10, %12 : vector<1x128xf32>
    %cst = arith.constant 0.000000e+00 : f32
    %14 = vector.broadcast %cst : f32 to vector<1x128xf32>
    %15 = arith.maximumf %13, %14 : vector<1x128xf32>
    %c12 = arith.constant 12 : index
    %16 = memref.load %arg1[%c12] : memref<17xf32, #tpu.memory_space<smem>>
    %17 = vector.broadcast %16 : f32 to vector<1x128xf32>
    %18 = arith.mulf %15, %17 : vector<1x128xf32>
    %c2 = arith.constant 2 : index
    %19 = memref.load %arg1[%c2] : memref<17xf32, #tpu.memory_space<smem>>
    %20 = vector.broadcast %19 : f32 to vector<1x128xf32>
    %21 = arith.mulf %1, %20 : vector<1x128xf32>
    %c3 = arith.constant 3 : index
    %22 = memref.load %arg1[%c3] : memref<17xf32, #tpu.memory_space<smem>>
    %23 = vector.broadcast %22 : f32 to vector<1x128xf32>
    %24 = arith.mulf %3, %23 : vector<1x128xf32>
    %25 = arith.addf %21, %24 : vector<1x128xf32>
    %c9 = arith.constant 9 : index
    %26 = memref.load %arg1[%c9] : memref<17xf32, #tpu.memory_space<smem>>
    %27 = vector.broadcast %26 : f32 to vector<1x128xf32>
    %28 = arith.addf %25, %27 : vector<1x128xf32>
    %cst_6 = arith.constant 0.000000e+00 : f32
    %29 = vector.broadcast %cst_6 : f32 to vector<1x128xf32>
    %30 = arith.maximumf %28, %29 : vector<1x128xf32>
    %c13 = arith.constant 13 : index
    %31 = memref.load %arg1[%c13] : memref<17xf32, #tpu.memory_space<smem>>
    %32 = vector.broadcast %31 : f32 to vector<1x128xf32>
    %33 = arith.mulf %30, %32 : vector<1x128xf32>
    %34 = arith.addf %18, %33 : vector<1x128xf32>
    %c4 = arith.constant 4 : index
    %35 = memref.load %arg1[%c4] : memref<17xf32, #tpu.memory_space<smem>>
    %36 = vector.broadcast %35 : f32 to vector<1x128xf32>
    %37 = arith.mulf %1, %36 : vector<1x128xf32>
    %c5 = arith.constant 5 : index
    %38 = memref.load %arg1[%c5] : memref<17xf32, #tpu.memory_space<smem>>
    %39 = vector.broadcast %38 : f32 to vector<1x128xf32>
    %40 = arith.mulf %3, %39 : vector<1x128xf32>
    %41 = arith.addf %37, %40 : vector<1x128xf32>
    %c10 = arith.constant 10 : index
    %42 = memref.load %arg1[%c10] : memref<17xf32, #tpu.memory_space<smem>>
    %43 = vector.broadcast %42 : f32 to vector<1x128xf32>
    %44 = arith.addf %41, %43 : vector<1x128xf32>
    %cst_7 = arith.constant 0.000000e+00 : f32
    %45 = vector.broadcast %cst_7 : f32 to vector<1x128xf32>
    %46 = arith.maximumf %44, %45 : vector<1x128xf32>
    %c14 = arith.constant 14 : index
    %47 = memref.load %arg1[%c14] : memref<17xf32, #tpu.memory_space<smem>>
    %48 = vector.broadcast %47 : f32 to vector<1x128xf32>
    %49 = arith.mulf %46, %48 : vector<1x128xf32>
    %50 = arith.addf %34, %49 : vector<1x128xf32>
    %c6 = arith.constant 6 : index
    %51 = memref.load %arg1[%c6] : memref<17xf32, #tpu.memory_space<smem>>
    %52 = vector.broadcast %51 : f32 to vector<1x128xf32>
    %53 = arith.mulf %1, %52 : vector<1x128xf32>
    %c7 = arith.constant 7 : index
    %54 = memref.load %arg1[%c7] : memref<17xf32, #tpu.memory_space<smem>>
    %55 = vector.broadcast %54 : f32 to vector<1x128xf32>
    %56 = arith.mulf %3, %55 : vector<1x128xf32>
    %57 = arith.addf %53, %56 : vector<1x128xf32>
    %c11 = arith.constant 11 : index
    %58 = memref.load %arg1[%c11] : memref<17xf32, #tpu.memory_space<smem>>
    %59 = vector.broadcast %58 : f32 to vector<1x128xf32>
    %60 = arith.addf %57, %59 : vector<1x128xf32>
    %cst_8 = arith.constant 0.000000e+00 : f32
    %61 = vector.broadcast %cst_8 : f32 to vector<1x128xf32>
    %62 = arith.maximumf %60, %61 : vector<1x128xf32>
    %c15 = arith.constant 15 : index
    %63 = memref.load %arg1[%c15] : memref<17xf32, #tpu.memory_space<smem>>
    %64 = vector.broadcast %63 : f32 to vector<1x128xf32>
    %65 = arith.mulf %62, %64 : vector<1x128xf32>
    %66 = arith.addf %50, %65 : vector<1x128xf32>
    %c16 = arith.constant 16 : index
    %67 = memref.load %arg1[%c16] : memref<17xf32, #tpu.memory_space<smem>>
    %68 = vector.broadcast %67 : f32 to vector<1x128xf32>
    %69 = arith.addf %66, %68 : vector<1x128xf32>
    %cst_9 = arith.constant 0.000000e+00 : f32
    %70 = vector.broadcast %cst_9 : f32 to vector<1x128xf32>
    %71 = arith.subf %70, %69 : vector<1x128xf32>
    %72 = math.exp %71 : vector<1x128xf32>
    %cst_10 = arith.constant 1.000000e+00 : f32
    %73 = vector.broadcast %cst_10 : f32 to vector<1x128xf32>
    %74 = arith.addf %73, %72 : vector<1x128xf32>
    %75 = tpu.reciprocal %74 {approx = true} : vector<1x128xf32> -> vector<1x128xf32>
    %c0_11 = arith.constant 0 : index
    %c0_12 = arith.constant 0 : index
    %76 = vector.load %arg3[%c0_11, %c0_12] : memref<1x128xf32, #tpu.memory_space<vmem>>, vector<1x128xf32>
    tpu.vector_store %arg3[%c0_11, %c0_12], %75 {strides = array<i32>} : memref<1x128xf32, #tpu.memory_space<vmem>>, vector<1x128xf32>,
    return
  }
  func.func @transform_0(%arg0: i32) -> i32 {
    %c0_i32 = arith.constant 0 : i32
    %c0_i32_0 = arith.constant 0 : i32
    return %c0_i32 : i32
  }
  func.func @transform_1(%arg0: i32) -> (i32, i32, i32) {
    %c0_i32 = arith.constant 0 : i32
    %c0_i32_0 = arith.constant 0 : i32
    %c0_i32_1 = arith.constant 0 : i32
    return %c0_i32, %arg0, %c0_i32_0 : i32, i32, i32
  }
  func.func @transform_2(%arg0: i32) -> (i32, i32) {
    %c0_i32 = arith.constant 0 : i32
    %c0_i32_0 = arith.constant 0 : i32
    return %arg0, %c0_i32 : i32, i32
  }
}

</mosaic_0001>

<bundles_post_ra>
// kernel: tpu_custom_call.1
= control target key start
LH: loop header
LB: loop body
LE: loop exit
PB: predicated region body
PF: predicated region fallthrough
CT: control target
= control target key end

     0   :  { %7 = vsyncpa [#allocation4], 0  ;;  %s233_s0 = inlined_call_operand.hbm [shape: f32[17], index: 0, kind: input, shape index: {}]   ;;  %s234_s1 = inlined_call_operand.vmem [shape: f32[2,1,128], index: 1, kind: input, shape index: {}]   ;;  %s235_s2 = inlined_call_operand.hbm [shape: f32[1,128], index: 2, kind: output, shape index: {}]  }
   0x1   :  { %8 = vsyncpa [#allocation3], 0  ;;  %s132_s11 = scalar_lea.hbm %s233_s0, 16 }
   0x2   :  { %p133_p0 = scmp.ne.s32.totalorder %s233_s0, %s132_s11  ;;  %p136_p1 = scmp.lt.u32.totalorder %s132_s11, %s233_s0 }
   0x4   :  { %p138_p2 = pnand %p136_p1, %p133_p0 }
   0x6   :  { %141 = shalt.err (!%p138_p2)
}
   0x7   :  { %s168_s16 = smov [#allocation2]  }
   0x8   :  { %16 = dma.hbm_to_smem %s233_s0, 16, %s168_s16, [#allocation4]  }
   0x9   :  { %164 = dma.done.wait [#allocation4], 16  }
   0xa   :  { %165 = vsyncadd [#allocation4], 4294967280 }
   0xb   :  { %22 = sfence }
   0xc   :  { %s26_s19 = sld [smem:[#allocation2]]  ;;  %s110_s20 = sld [smem:[#allocation2 + $0x1]]  ;;  %v23_v0 = vld [vmem:[%s234_s1] sm:$0x1]  ;;  %v109_v1 = vld [vmem:[%s234_s1 + $0x1] sm:$0x1] }
   0xd   :  { %s111_s21 = sld [smem:[#allocation2 + $0x8]]  ;;  %s113_s22 = sld [smem:[#allocation2 + $0x2]] }
   0xe   :  { %s114_s23 = sld [smem:[#allocation2 + $0x3]]  ;;  %s197_s24 = sld [smem:[#allocation2 + $0x9]] }
   0xf   :  { %s202_s27 = sld [smem:[#allocation2 + $0xc]]  ;;  %s118_s0 = sld [smem:[#allocation2 + $0x5]] }
  0x10   :  { %s117_s28 = sld [smem:[#allocation2 + $0x4]]  ;;  %s207_s3 = sld [smem:[#allocation2 + $0xa]] }
  0x11   :  { %s121_s4 = sld [smem:[#allocation2 + $0x6]]  ;;  %s209_s5 = sld [smem:[#allocation2 + $0xd]] }
  0x12   :  { %v27_v2 = vstv %s26_s19  ;;  %v30_v4 = vstv %s110_s20  ;;  %s122_s6 = sld [smem:[#allocation2 + $0x7]]  ;;  %s211_s7 = sld [smem:[#allocation2 + $0xb]] }
  0x13   :  { %v28_v3 = vmul.f32 %v27_v2, %v23_v0  ;;  %v31_v5 = vmul.f32 %v109_v1, %v30_v4  ;;  %v41_v6 = vstv %s113_s22  ;;  %v34_v7 = vstv %s111_s21  ;;  %s213_s1 = sld [smem:[#allocation2 + $0xe]]  ;;  %s124_s8 = sld [smem:[#allocation2 + $0xf]] }
  0x14   :  { %v42_v8 = vmul.f32 %v41_v6, %v23_v0  ;;  %v44_v9 = vstv %s114_s23  ;;  %v48_v13 = vstv %s197_s24  ;;  %s125_s9 = sld [smem:[#allocation2 + $0x10]]  ;;  %s169_s10 = smov [#allocation5]  }
  0x15   :  { %v32_v10 = vadd.f32 %v31_v5, %v28_v3  ;;  %v45_v11 = vmul.f32 %v109_v1, %v44_v9  ;;  %v59_v15 = vstv %s118_s0  ;;  %v38_v19 = vstv %s202_s27  ;;  %s100_s11 = sshll.u32 %s169_s10, 4  ;;  %s101_s11 = int_to_ptr.vmem [resolvable:$true] %s100_s11 }
  0x16   :  { %v56_v12 = vstv %s117_s28  ;;  %v60_v18 = vmul.f32 %v109_v1, %v59_v15  ;;  %v63_v20 = vstv %s207_s3  ;;  %s142_s12 = scalar_lea.vmem %s101_s11, 16  ;;  %s146_s13 = scalar_lea.vmem %s101_s11, 32 }
  0x17   :  { %v57_v14 = vmul.f32 %v56_v12, %v23_v0  ;;  %v35_v16 = vadd.f32 %v34_v7, %v32_v10  ;;  %v46_v17 = vadd.f32 %v45_v11, %v42_v8  ;;  %v71_v21 = vstv %s121_s4  ;;  %p143_p3 = scmp.ne.s32.totalorder %s101_s11, %s142_s12  ;;  %p147_p4 = scmp.lt.s32.totalorder %s101_s11, %s101_s11 }
  0x18   :  { %v74_v22 = vstv %s122_s6  ;;  %v72_v26 = vmul.f32 %v71_v21, %v23_v0  ;;  %v52_v27 = vstv %s209_s5  ;;  %v78_v32 = vstv %s211_s7  ;;  %p148_p5 = scmp.lt.s32.totalorder %s146_s13, %s142_s12 }
  0x19   :  { %v36_v23 = vmax.f32 %v35_v16, 0.0  ;;  %v49_v24 = vadd.f32 %v48_v13, %v46_v17  ;;  %v61_v25 = vadd.f32 %v60_v18, %v57_v14  ;;  %v75_v28 = vmul.f32 %v109_v1, %v74_v22 }
  0x1a   :  { %v67_v33 = vstv %s213_s1  ;;  %v82_v40 = vstv %s124_s8  ;;  %v86_v44 = vstv %s125_s9  ;;  %p149_p6 = por %p148_p5, %p147_p4 }
  0x1b   :  { %v39_v29 = vmul.f32 %v38_v19, %v36_v23  ;;  %v50_v30 = vmax.f32 %v49_v24, 0.0  ;;  %v64_v31 = vadd.f32 %v63_v20, %v61_v25  ;;  %v76_v34 = vadd.f32 %v75_v28, %v72_v26 }
  0x1c   :  { %p150_p7 = pnand %p149_p6, %p143_p3 }
  0x1d   :  { %v53_v35 = vmul.f32 %v52_v27, %v50_v30  ;;  %v65_v36 = vmax.f32 %v64_v31, 0.0  ;;  %v79_v37 = vadd.f32 %v78_v32, %v76_v34 }
  0x1f   :  { %v54_v38 = vadd.f32 %v53_v35, %v39_v29  ;;  %v68_v39 = vmul.f32 %v67_v33, %v65_v36  ;;  %v80_v41 = vmax.f32 %v79_v37, 0.0 }
  0x21   :  { %v69_v42 = vadd.f32 %v68_v39, %v54_v38  ;;  %v83_v43 = vmul.f32 %v82_v40, %v80_v41 }
  0x23   :  { %v84_v45 = vadd.f32 %v83_v43, %v69_v42 }
  0x25   :  { %v87_v46 = vadd.f32 %v86_v44, %v84_v45 }
  0x27   :  { %v88_v47 = vsub.f32 0.0, %v87_v46 }
  0x29   :  { %v89_v48 = vmul.f32 1.442695, %v88_v47 }
  0x2b   :  { %128 = vpow2.f32 %v89_v48 }
  0x35   :  { %v129_v49 = vpop.eup %128 }
  0x36   :  { %v91_v50 = vadd.f32 1.0, %v129_v49 }
  0x38   :  { %130 = vrcp.f32 %v91_v50 }
  0x42   :  { %v131_v51 = vpop.eup %130 }
  0x43   :  { %93 = vst [vmem:[#allocation5] sm:$0x1] %v131_v51 }
  0x44   :  { %153 = shalt.err (!%p150_p7)
}
  0x45   :  { %s154_s16 = scalar_lea.hbm %s235_s2, 16 }
  0x46   :  { %p155_p8 = scmp.ne.s32.totalorder %s235_s2, %s154_s16  ;;  %p158_p9 = scmp.lt.u32.totalorder %s154_s16, %s235_s2 }
  0x48   :  { %p160_p10 = pnand %p158_p9, %p155_p8 }
  0x4a   :  { %163 = shalt.err (!%p160_p10)
}
  0x4b   :  { %103 = dma.vmem_to_hbm [thread:$0]  %s101_s11, 16, %s235_s2, [#allocation3]  }
  0x4c   :  { %166 = dma.done.wait [#allocation3], 16  }
  0x4d   :  { %167 = vsyncadd [#allocation3], 4294967280 }
  0x4e   :  { %107 = vsyncpa [#allocation3], 1 }
  0x4f   :  { %108 = vsyncpa [#allocation4], 1 }

</bundles_post_ra>
